<compile_context>
chip_gen: v7x
topology: tpu7x:2x2x1
jax: 0.10.0
libtpu: 0.0.40
codegen_flags: <defaults>
</compile_context>

<pallas_src>
import functools

import numpy as np
import jax
import jax.numpy as jnp
from jax import lax
from jax.experimental import pallas as pl
from jax.experimental.pallas import tpu as pltpu

# 128-lane-aligned column offsets of each segment inside the packed param array.
_O_W1, _O_W2, _O_W3, _O_B1, _O_B2, _O_B3 = 0, 128, 256, 384, 512, 640
_PACK_W = 768


def _tensorcore_count():
    """Best-effort TensorCore count (v7x: 2, v5e/v6e: 1). Falls back to 1."""
    try:
        info = pltpu.get_tpu_info()
        for name in ("num_cores", "core_count", "num_tensorcores",
                     "tensorcores_per_chip", "cores_per_chip"):
            v = getattr(info, name, None)
            if isinstance(v, (int, np.integer)) and v > 0:
                return int(v)
    except Exception:
        pass
    try:
        v = getattr(jax.devices()[0], "num_cores", None)
        if isinstance(v, (int, np.integer)) and v > 0:
            return int(v)
    except Exception:
        pass
    return 1


def _bottleneck_kernel(x_ref, p_ref, o_ref, patch_ref, *, H, W, Cin, Cout, Pp):
    S = H * W
    L = x_ref.shape[1]                       # lanes per step = (images/step) * H*W

    # ---- unpack fused, BN-folded params (each segment is 128-lane aligned) ----
    w1 = p_ref[0:Pp, _O_W1:_O_W1 + Cin]          # (Pp, Cin)   BN1-scaled
    w2 = p_ref[0:Pp, _O_W2:_O_W2 + 9 * Pp]       # (Pp, 9*Pp)  BN2-scaled, im2col layout
    w3 = p_ref[0:Cout, _O_W3:_O_W3 + Pp]         # (Cout, Pp)  BN3-scaled
    b1 = p_ref[0:Pp, _O_B1:_O_B1 + 1]            # (Pp, 1)     BN shifts
    b2 = p_ref[0:Pp, _O_B2:_O_B2 + 1]
    b3 = p_ref[0:Cout, _O_B3:_O_B3 + 1]

    x = x_ref[...]                                # (Cin, L) f32

    # ---- conv1 (1x1, BN1 scale pre-folded) + shift + ReLU ---------------------
    a = jnp.dot(w1, x, preferred_element_type=jnp.float32)         # (Pp, L)
    a = jnp.maximum(a + b1, 0.0)

    # ---- boundary masks (hoisted out of the tap loop) -------------------------
    col = lax.broadcasted_iota(jnp.int32, (1, L), 1)                # flat lane idx
    pix = (col & (S - 1)) if (S & (S - 1)) == 0 else (col % S)      # pixel in image
    win = (pix & (W - 1)) if (W & (W - 1)) == 0 else (pix % W)      # column in row
    not_top = pix >= W
    not_bot = pix < S - W
    not_left = win >= 1
    not_right = win < W - 1

    # ---- conv2 (3x3, SAME) as im2col: 8 lane-rolls (XLU) + masked taps stored
    #      at 8-aligned rows of a VMEM scratch, then ONE K=9*Pp matmul -----------
    ti = 0
    for dy, vy in ((-1, not_top), (0, None), (1, not_bot)):
        for dx, vx in ((-1, not_left), (0, None), (1, not_right)):
            off = dy * W + dx
            # t[l] = a[l + off]; wrap-around / cross-image lanes masked below.
            t = a if off == 0 else pltpu.roll(a, (-off) % L, 1)
            valid = vy if vx is None else (vx if vy is None else (vy & vx))
            tap = t if valid is None else jnp.where(valid, t, 0.0)
            patch_ref[ti * Pp:(ti + 1) * Pp, :] = tap               # aligned store
            ti += 1

    a = jnp.dot(w2, patch_ref[...], preferred_element_type=jnp.float32)   # (Pp, L)
    a = jnp.maximum(a + b2, 0.0)

    # ---- conv3 (1x1, BN3 scale pre-folded) + shift + residual + ReLU ----------
    a = jnp.dot(w3, a, preferred_element_type=jnp.float32)          # (Cout, L)
    o_ref[...] = jnp.maximum(a + b3 + x, 0.0).astype(o_ref.dtype)


def sparse_bottleneck(x_nchw, params):
    """x_nchw: (N, Cin, H, W) f32. params from fold_params(). -> (N, Cout, H, W)."""
    N, Cin, H, W = x_nchw.shape
    Cout, Pp = params["cout"], params["pp"]
    assert Cout == Cin, "stride=1 residual requires in_planes == planes*expansion"
    S = H * W

    # One grid step per TensorCore (single step on v5e/v6e, one per TC on v7x);
    # each step sees a lane-dense (C, images_per_step * S) slab.
    cores = _tensorcore_count()
    G = cores if (cores >= 1 and N % cores == 0) else 1
    L = (N // G) * S

    # Tiny wrapper-side layout change (32 KiB): channels-first, batch on lanes.
    x_cf = jnp.transpose(x_nchw.reshape(N, Cin, S), (1, 0, 2)).reshape(Cin, N * S)
    packed = params["packed"]

    out_cf = pl.pallas_call(
        functools.partial(_bottleneck_kernel, H=H, W=W, Cin=Cin, Cout=Cout, Pp=Pp),
        out_shape=jax.ShapeDtypeStruct((Cout, N * S), jnp.float32),
        grid=(G,),
        in_specs=[
            pl.BlockSpec((Cin, L), lambda g: (0, g)),
            pl.BlockSpec(packed.shape, lambda g: (0, 0)),   # one DMA (constant map)
        ],
        out_specs=pl.BlockSpec((Cout, L), lambda g: (0, g)),
        scratch_shapes=[pltpu.VMEM((9 * Pp, L), jnp.float32)],      # im2col patch
        compiler_params=pltpu.CompilerParams(dimension_semantics=("parallel",)),
    )(x_cf, packed)

    return jnp.transpose(out_cf.reshape(Cout, N, S), (1, 0, 2)).reshape(N, Cout, H, W)


def make_raw_params(key, in_planes, planes, expansion=4):
    """Raw module parameters: conv weights + BN (gamma, beta, running mean/var)."""
    cout = planes * expansion
    ks = jax.random.split(key, 6)

    def bn(k, n):
        kg, kb, km, kv = jax.random.split(k, 4)
        return dict(
            gamma=jax.random.uniform(kg, (n,), jnp.float32, 0.5, 1.5),
            beta=0.1 * jax.random.normal(kb, (n,), jnp.float32),
            mean=0.1 * jax.random.normal(km, (n,), jnp.float32),
            var=jax.random.uniform(kv, (n,), jnp.float32, 0.5, 1.5))

    w1 = 0.2 * jax.random.normal(ks[0], (in_planes, planes), jnp.float32)   # (Cin, P)
    w2 = 0.2 * jax.random.normal(ks[1], (9, planes, planes), jnp.float32)   # (tap, Pin, Pout)
    w3 = 0.2 * jax.random.normal(ks[2], (planes, cout), jnp.float32)        # (P, Cout)
    return dict(w1=w1, w2=w2, w3=w3,
                bn1=bn(ks[3], planes), bn2=bn(ks[4], planes), bn3=bn(ks[5], cout))


def fold_params(raw, eps=1e-5, pp=8):
    """Host-side, one-time: fold BN scales into weights, pad planes to the 8-row
    sublane tile, and pack everything into one 128-lane-aligned param array."""
    def affine(p):
        scale = p["gamma"] / jnp.sqrt(p["var"] + eps)
        return scale, p["beta"] - p["mean"] * scale

    s1, b1 = affine(raw["bn1"])
    s2, b2 = affine(raw["bn2"])
    s3, b3 = affine(raw["bn3"])
    Cin, P = raw["w1"].shape
    Cout = raw["w3"].shape[1]
    assert P <= pp and Cin <= 128 and 9 * pp <= 128 and Cout <= 128

    # conv1: (Pp, Cin), BN1-scaled, rows P..pp zero.
    w1 = jnp.zeros((pp, Cin), jnp.float32).at[:P, :].set(raw["w1"].T * s1[:, None])
    # conv2: (Pp, 9*Pp) im2col layout; padded input/output planes stay zero.
    w2full = jnp.zeros((9, pp, pp), jnp.float32).at[:, :P, :P].set(raw["w2"])
    s2p = jnp.zeros((pp,), jnp.float32).at[:P].set(s2)
    w2 = jnp.transpose(w2full, (2, 0, 1)).reshape(pp, 9 * pp) * s2p[:, None]
    # conv3: (Cout, Pp), BN3-scaled.
    w3 = jnp.zeros((Cout, pp), jnp.float32).at[:, :P].set(raw["w3"].T * s3[:, None])
    b1p = jnp.zeros((pp,), jnp.float32).at[:P].set(b1)
    b2p = jnp.zeros((pp,), jnp.float32).at[:P].set(b2)

    rows = ((max(Cout, pp) + 7) // 8) * 8
    packed = jnp.zeros((rows, _PACK_W), jnp.float32)
    packed = packed.at[:pp, _O_W1:_O_W1 + Cin].set(w1)
    packed = packed.at[:pp, _O_W2:_O_W2 + 9 * pp].set(w2)
    packed = packed.at[:Cout, _O_W3:_O_W3 + pp].set(w3)
    packed = packed.at[:pp, _O_B1].set(b1p)
    packed = packed.at[:pp, _O_B2].set(b2p)
    packed = packed.at[:Cout, _O_B3].set(b3)
    return dict(packed=packed, cin=Cin, cout=Cout, pp=pp)


def reference(x_nchw, raw, eps=1e-5):
    """Pure-JAX reference of the same forward pass (conv -> BN -> ReLU chain)."""
    P = raw["w1"].shape[1]

    def bn(a, p):
        scale = p["gamma"] / jnp.sqrt(p["var"] + eps)
        return a * scale + (p["beta"] - p["mean"] * scale)

    x = jnp.transpose(x_nchw, (0, 2, 3, 1))                         # NHWC
    a = jnp.einsum("nhwc,cd->nhwd", x, raw["w1"])
    a = jax.nn.relu(bn(a, raw["bn1"]))
    w2 = raw["w2"].reshape(3, 3, P, P)                              # HWIO
    a = jax.lax.conv_general_dilated(a, w2, (1, 1), "SAME",
                                     dimension_numbers=("NHWC", "HWIO", "NHWC"))
    a = jax.nn.relu(bn(a, raw["bn2"]))
    a = jnp.einsum("nhwc,cd->nhwd", a, raw["w3"])
    a = bn(a, raw["bn3"])
    out = jax.nn.relu(a + x)
    return jnp.transpose(out, (0, 3, 1, 2))


if __name__ == "__main__":
    # SparseBottleneck(in_planes=16, planes=4, stride=1); expansion=4 -> Cout=16.
    N, in_planes, planes, H, W = 2, 16, 4, 16, 16

    key = jax.random.PRNGKey(0)
    kx, kp = jax.random.split(key)
    x = jax.random.normal(kx, (N, in_planes, H, W), jnp.float32)    # NCHW
    raw = make_raw_params(kp, in_planes, planes)
    params = fold_params(raw)

    out = jax.block_until_ready(sparse_bottleneck(x, params))
    ref = jax.block_until_ready(reference(x, raw))
    np.testing.assert_allclose(np.asarray(out), np.asarray(ref),
                               rtol=2e-4, atol=2e-4)
    print("KERNEL_OK")
</pallas_src>

<mosaic_0001>
module attributes {stable_mosaic.version = 11 : i64} {
  func.func @_bottleneck_kernel(%arg0: i32, %arg1: memref<16x512xf32, #tpu.memory_space<vmem>>, %arg2: memref<16x768xf32, #tpu.memory_space<vmem>>, %arg3: memref<16x512xf32, #tpu.memory_space<vmem>>, %arg4: memref<72x512xf32, #tpu.memory_space<vmem>>) attributes {dimension_semantics = [#tpu.dimension_semantics<parallel>], iteration_bounds = array<i64: 1>, scalar_prefetch = 0 : i64, scratch_operands = 1 : i64, tpu.core_type = #tpu.core_type<tc>, window_params = [{transform_indices = @transform_0, window_bounds = array<i64: 16, 512>}, {pipeline_mode = #tpu.pipeline_mode<synchronous>, transform_indices = @transform_1, window_bounds = array<i64: 16, 768>}, {transform_indices = @transform_2, window_bounds = array<i64: 16, 512>}]} {
    %c0 = arith.constant 0 : index
    %c0_0 = arith.constant 0 : index
    %0 = vector.load %arg2[%c0, %c0_0] : memref<16x768xf32, #tpu.memory_space<vmem>>, vector<8x16xf32>
    %c0_1 = arith.constant 0 : index
    %c128 = arith.constant 128 : index
    %1 = vector.load %arg2[%c0_1, %c128] : memref<16x768xf32, #tpu.memory_space<vmem>>, vector<8x72xf32>
    %c0_2 = arith.constant 0 : index
    %c256 = arith.constant 256 : index
    %2 = vector.load %arg2[%c0_2, %c256] : memref<16x768xf32, #tpu.memory_space<vmem>>, vector<16x8xf32>
    %c0_3 = arith.constant 0 : index
    %c384 = arith.constant 384 : index
    %3 = vector.load %arg2[%c0_3, %c384] : memref<16x768xf32, #tpu.memory_space<vmem>>, vector<8x1xf32>
    %c0_4 = arith.constant 0 : index
    %c512 = arith.constant 512 : index
    %4 = vector.load %arg2[%c0_4, %c512] : memref<16x768xf32, #tpu.memory_space<vmem>>, vector<8x1xf32>
    %c0_5 = arith.constant 0 : index
    %c640 = arith.constant 640 : index
    %5 = vector.load %arg2[%c0_5, %c640] : memref<16x768xf32, #tpu.memory_space<vmem>>, vector<16x1xf32>
    %c0_6 = arith.constant 0 : index
    %c0_7 = arith.constant 0 : index
    %6 = vector.load %arg1[%c0_6, %c0_7] : memref<16x512xf32, #tpu.memory_space<vmem>>, vector<16x512xf32>
    %cst = arith.constant dense<0.000000e+00> : vector<8x512xf32>
    %7 = tpu.matmul %0, %6, %cst {dimension_numbers = #tpu.dot_dimension_numbers<[1], [0], [0], [1], [0, 0, 1, 1], [], []>} : vector<8x16xf32>, vector<16x512xf32>, vector<8x512xf32> -> vector<8x512xf32>
    %8 = vector.broadcast %3 : vector<8x1xf32> to vector<8x512xf32>
    %9 = arith.addf %7, %8 : vector<8x512xf32>
    %cst_8 = arith.constant 0.000000e+00 : f32
    %10 = vector.broadcast %cst_8 : f32 to vector<8x512xf32>
    %11 = arith.maximumf %9, %10 : vector<8x512xf32>
    %12 = tpu.iota {dimensions = array<i32: 1>} : vector<1x512xi32>
    %c255_i32 = arith.constant 255 : i32
    %13 = vector.broadcast %c255_i32 : i32 to vector<1x512xi32>
    %14 = arith.andi %12, %13 : vector<1x512xi32>
    %c15_i32 = arith.constant 15 : i32
    %15 = vector.broadcast %c15_i32 : i32 to vector<1x512xi32>
    %16 = arith.andi %14, %15 : vector<1x512xi32>
    %c16_i32 = arith.constant 16 : i32
    %17 = vector.broadcast %c16_i32 : i32 to vector<1x512xi32>
    %18 = arith.cmpi sge, %14, %17 : vector<1x512xi32>
    %c240_i32 = arith.constant 240 : i32
    %19 = vector.broadcast %c240_i32 : i32 to vector<1x512xi32>
    %20 = arith.cmpi slt, %14, %19 : vector<1x512xi32>
    %c1_i32 = arith.constant 1 : i32
    %21 = vector.broadcast %c1_i32 : i32 to vector<1x512xi32>
    %22 = arith.cmpi sge, %16, %21 : vector<1x512xi32>
    %c15_i32_9 = arith.constant 15 : i32
    %23 = vector.broadcast %c15_i32_9 : i32 to vector<1x512xi32>
    %24 = arith.cmpi slt, %16, %23 : vector<1x512xi32>
    %c17_i32 = arith.constant 17 : i32
    %25 = tpu.dynamic_rotate %11 by %c17_i32 dim 1 : vector<8x512xf32>, i32 -> vector<8x512xf32>
    %26 = arith.andi %18, %22 : vector<1x512xi1>
    %cst_10 = arith.constant 0.000000e+00 : f32
    %27 = vector.shape_cast %26 : vector<1x512xi1> to vector<1x512xi1>
    %28 = vector.broadcast %27 : vector<1x512xi1> to vector<8x512xi1>
    %29 = vector.broadcast %cst_10 : f32 to vector<8x512xf32>
    %30 = arith.select %28, %25, %29 : vector<8x512xi1>, vector<8x512xf32>
    %c0_11 = arith.constant 0 : index
    %c0_12 = arith.constant 0 : index
    %31 = vector.load %arg4[%c0_11, %c0_12] : memref<72x512xf32, #tpu.memory_space<vmem>>, vector<8x512xf32>
    tpu.vector_store %arg4[%c0_11, %c0_12], %30 {strides = array<i32>} : memref<72x512xf32, #tpu.memory_space<vmem>>, vector<8x512xf32>,
    %c16_i32_13 = arith.constant 16 : i32
    %32 = tpu.dynamic_rotate %11 by %c16_i32_13 dim 1 : vector<8x512xf32>, i32 -> vector<8x512xf32>
    %cst_14 = arith.constant 0.000000e+00 : f32
    %33 = vector.shape_cast %18 : vector<1x512xi1> to vector<1x512xi1>
    %34 = vector.broadcast %33 : vector<1x512xi1> to vector<8x512xi1>
    %35 = vector.broadcast %cst_14 : f32 to vector<8x512xf32>
    %36 = arith.select %34, %32, %35 : vector<8x512xi1>, vector<8x512xf32>
    %c8 = arith.constant 8 : index
    %c0_15 = arith.constant 0 : index
    %37 = vector.load %arg4[%c8, %c0_15] : memref<72x512xf32, #tpu.memory_space<vmem>>, vector<8x512xf32>
    tpu.vector_store %arg4[%c8, %c0_15], %36 {strides = array<i32>} : memref<72x512xf32, #tpu.memory_space<vmem>>, vector<8x512xf32>,
    %c15_i32_16 = arith.constant 15 : i32
    %38 = tpu.dynamic_rotate %11 by %c15_i32_16 dim 1 : vector<8x512xf32>, i32 -> vector<8x512xf32>
    %39 = arith.andi %18, %24 : vector<1x512xi1>
    %cst_17 = arith.constant 0.000000e+00 : f32
    %40 = vector.shape_cast %39 : vector<1x512xi1> to vector<1x512xi1>
    %41 = vector.broadcast %40 : vector<1x512xi1> to vector<8x512xi1>
    %42 = vector.broadcast %cst_17 : f32 to vector<8x512xf32>
    %43 = arith.select %41, %38, %42 : vector<8x512xi1>, vector<8x512xf32>
    %c16 = arith.constant 16 : index
    %c0_18 = arith.constant 0 : index
    %44 = vector.load %arg4[%c16, %c0_18] : memref<72x512xf32, #tpu.memory_space<vmem>>, vector<8x512xf32>
    tpu.vector_store %arg4[%c16, %c0_18], %43 {strides = array<i32>} : memref<72x512xf32, #tpu.memory_space<vmem>>, vector<8x512xf32>,
    %c1_i32_19 = arith.constant 1 : i32
    %45 = tpu.dynamic_rotate %11 by %c1_i32_19 dim 1 : vector<8x512xf32>, i32 -> vector<8x512xf32>
    %cst_20 = arith.constant 0.000000e+00 : f32
    %46 = vector.shape_cast %22 : vector<1x512xi1> to vector<1x512xi1>
    %47 = vector.broadcast %46 : vector<1x512xi1> to vector<8x512xi1>
    %48 = vector.broadcast %cst_20 : f32 to vector<8x512xf32>
    %49 = arith.select %47, %45, %48 : vector<8x512xi1>, vector<8x512xf32>
    %c24 = arith.constant 24 : index
    %c0_21 = arith.constant 0 : index
    %50 = vector.load %arg4[%c24, %c0_21] : memref<72x512xf32, #tpu.memory_space<vmem>>, vector<8x512xf32>
    tpu.vector_store %arg4[%c24, %c0_21], %49 {strides = array<i32>} : memref<72x512xf32, #tpu.memory_space<vmem>>, vector<8x512xf32>,
    %c32 = arith.constant 32 : index
    %c0_22 = arith.constant 0 : index
    %51 = vector.load %arg4[%c32, %c0_22] : memref<72x512xf32, #tpu.memory_space<vmem>>, vector<8x512xf32>
    tpu.vector_store %arg4[%c32, %c0_22], %11 {strides = array<i32>} : memref<72x512xf32, #tpu.memory_space<vmem>>, vector<8x512xf32>,
    %c511_i32 = arith.constant 511 : i32
    %52 = tpu.dynamic_rotate %11 by %c511_i32 dim 1 : vector<8x512xf32>, i32 -> vector<8x512xf32>
    %cst_23 = arith.constant 0.000000e+00 : f32
    %53 = vector.shape_cast %24 : vector<1x512xi1> to vector<1x512xi1>
    %54 = vector.broadcast %53 : vector<1x512xi1> to vector<8x512xi1>
    %55 = vector.broadcast %cst_23 : f32 to vector<8x512xf32>
    %56 = arith.select %54, %52, %55 : vector<8x512xi1>, vector<8x512xf32>
    %c40 = arith.constant 40 : index
    %c0_24 = arith.constant 0 : index
    %57 = vector.load %arg4[%c40, %c0_24] : memref<72x512xf32, #tpu.memory_space<vmem>>, vector<8x512xf32>
    tpu.vector_store %arg4[%c40, %c0_24], %56 {strides = array<i32>} : memref<72x512xf32, #tpu.memory_space<vmem>>, vector<8x512xf32>,
    %c497_i32 = arith.constant 497 : i32
    %58 = tpu.dynamic_rotate %11 by %c497_i32 dim 1 : vector<8x512xf32>, i32 -> vector<8x512xf32>
    %59 = arith.andi %20, %22 : vector<1x512xi1>
    %cst_25 = arith.constant 0.000000e+00 : f32
    %60 = vector.shape_cast %59 : vector<1x512xi1> to vector<1x512xi1>
    %61 = vector.broadcast %60 : vector<1x512xi1> to vector<8x512xi1>
    %62 = vector.broadcast %cst_25 : f32 to vector<8x512xf32>
    %63 = arith.select %61, %58, %62 : vector<8x512xi1>, vector<8x512xf32>
    %c48 = arith.constant 48 : index
    %c0_26 = arith.constant 0 : index
    %64 = vector.load %arg4[%c48, %c0_26] : memref<72x512xf32, #tpu.memory_space<vmem>>, vector<8x512xf32>
    tpu.vector_store %arg4[%c48, %c0_26], %63 {strides = array<i32>} : memref<72x512xf32, #tpu.memory_space<vmem>>, vector<8x512xf32>,
    %c496_i32 = arith.constant 496 : i32
    %65 = tpu.dynamic_rotate %11 by %c496_i32 dim 1 : vector<8x512xf32>, i32 -> vector<8x512xf32>
    %cst_27 = arith.constant 0.000000e+00 : f32
    %66 = vector.shape_cast %20 : vector<1x512xi1> to vector<1x512xi1>
    %67 = vector.broadcast %66 : vector<1x512xi1> to vector<8x512xi1>
    %68 = vector.broadcast %cst_27 : f32 to vector<8x512xf32>
    %69 = arith.select %67, %65, %68 : vector<8x512xi1>, vector<8x512xf32>
    %c56 = arith.constant 56 : index
    %c0_28 = arith.constant 0 : index
    %70 = vector.load %arg4[%c56, %c0_28] : memref<72x512xf32, #tpu.memory_space<vmem>>, vector<8x512xf32>
    tpu.vector_store %arg4[%c56, %c0_28], %69 {strides = array<i32>} : memref<72x512xf32, #tpu.memory_space<vmem>>, vector<8x512xf32>,
    %c495_i32 = arith.constant 495 : i32
    %71 = tpu.dynamic_rotate %11 by %c495_i32 dim 1 : vector<8x512xf32>, i32 -> vector<8x512xf32>
    %72 = arith.andi %20, %24 : vector<1x512xi1>
    %cst_29 = arith.constant 0.000000e+00 : f32
    %73 = vector.shape_cast %72 : vector<1x512xi1> to vector<1x512xi1>
    %74 = vector.broadcast %73 : vector<1x512xi1> to vector<8x512xi1>
    %75 = vector.broadcast %cst_29 : f32 to vector<8x512xf32>
    %76 = arith.select %74, %71, %75 : vector<8x512xi1>, vector<8x512xf32>
    %c64 = arith.constant 64 : index
    %c0_30 = arith.constant 0 : index
    %77 = vector.load %arg4[%c64, %c0_30] : memref<72x512xf32, #tpu.memory_space<vmem>>, vector<8x512xf32>
    tpu.vector_store %arg4[%c64, %c0_30], %76 {strides = array<i32>} : memref<72x512xf32, #tpu.memory_space<vmem>>, vector<8x512xf32>,
    %c0_31 = arith.constant 0 : index
    %c0_32 = arith.constant 0 : index
    %78 = vector.load %arg4[%c0_31, %c0_32] : memref<72x512xf32, #tpu.memory_space<vmem>>, vector<72x512xf32>
    %cst_33 = arith.constant dense<0.000000e+00> : vector<8x512xf32>
    %79 = tpu.matmul %1, %78, %cst_33 {dimension_numbers = #tpu.dot_dimension_numbers<[1], [0], [0], [1], [0, 0, 1, 1], [], []>} : vector<8x72xf32>, vector<72x512xf32>, vector<8x512xf32> -> vector<8x512xf32>
    %80 = vector.broadcast %4 : vector<8x1xf32> to vector<8x512xf32>
    %81 = arith.addf %79, %80 : vector<8x512xf32>
    %cst_34 = arith.constant 0.000000e+00 : f32
    %82 = vector.broadcast %cst_34 : f32 to vector<8x512xf32>
    %83 = arith.maximumf %81, %82 : vector<8x512xf32>
    %cst_35 = arith.constant dense<0.000000e+00> : vector<16x512xf32>
    %84 = tpu.matmul %2, %83, %cst_35 {dimension_numbers = #tpu.dot_dimension_numbers<[1], [0], [0], [1], [0, 0, 1, 1], [], []>} : vector<16x8xf32>, vector<8x512xf32>, vector<16x512xf32> -> vector<16x512xf32>
    %85 = vector.broadcast %5 : vector<16x1xf32> to vector<16x512xf32>
    %86 = arith.addf %84, %85 : vector<16x512xf32>
    %87 = arith.addf %86, %6 : vector<16x512xf32>
    %cst_36 = arith.constant 0.000000e+00 : f32
    %88 = vector.broadcast %cst_36 : f32 to vector<16x512xf32>
    %89 = arith.maximumf %87, %88 : vector<16x512xf32>
    %c0_37 = arith.constant 0 : index
    %c0_38 = arith.constant 0 : index
    %90 = vector.load %arg3[%c0_37, %c0_38] : memref<16x512xf32, #tpu.memory_space<vmem>>, vector<16x512xf32>
    tpu.vector_store %arg3[%c0_37, %c0_38], %89 {strides = array<i32>} : memref<16x512xf32, #tpu.memory_space<vmem>>, vector<16x512xf32>,
    return
  }
  func.func @transform_0(%arg0: i32) -> (i32, i32) {
    %c0_i32 = arith.constant 0 : i32
    %c0_i32_0 = arith.constant 0 : i32
    return %c0_i32, %arg0 : i32, i32
  }
  func.func @transform_1(%arg0: i32) -> (i32, i32) {
    %c0_i32 = arith.constant 0 : i32
    %c0_i32_0 = arith.constant 0 : i32
    %c0_i32_1 = arith.constant 0 : i32
    return %c0_i32, %c0_i32_0 : i32, i32
  }
  func.func @transform_2(%arg0: i32) -> (i32, i32) {
    %c0_i32 = arith.constant 0 : i32
    %c0_i32_0 = arith.constant 0 : i32
    return %c0_i32, %arg0 : i32, i32
  }
}

</mosaic_0001>

<bundles_post_ra>
// kernel: tpu_custom_call.1
= control target key start
LH: loop header
LB: loop body
LE: loop exit
PB: predicated region body
PF: predicated region fallthrough
CT: control target
= control target key end

     0   :  { %7 = vsyncpa [#allocation4], 0  ;;  %s1546_s0 = inlined_call_operand.hbm [shape: f32[16,512], index: 0, kind: input, shape index: {}]   ;;  %s1547_s1 = inlined_call_operand.hbm [shape: f32[16,768], index: 1, kind: input, shape index: {}]   ;;  %s1548_s2 = inlined_call_operand.hbm [shape: f32[16,512], index: 2, kind: output, shape index: {}]  }
   0x1   :  { %8 = vsyncpa [#allocation7], 0 }
   0x2   :  { %9 = vsyncpa [#allocation5], 0  ;;  %s1150_s9 = smov [#allocation3]   ;;  %s1078_s13 = scalar_lea.hbm %s1546_s0, 1024 }
   0x3   :  { %s15_s10 = sshll.u32 %s1150_s9, 4  ;;  %p1079_p0 = scmp.ne.s32.totalorder %s1546_s0, %s1078_s13  ;;  %s16_s10 = int_to_ptr.vmem [resolvable:$true] %s15_s10 }
   0x4   :  { %p1082_p1 = scmp.lt.u32.totalorder %s1078_s13, %s1546_s0 }
   0x6   :  { %p1084_p2 = pnand %p1082_p1, %p1079_p0 }
   0x8   :  { %1087 = shalt.err (!%p1084_p2)
}
   0x9   :  { %s1088_s18 = scalar_lea.vmem %s16_s10, 1024  ;;  %p1093_p4 = scmp.lt.s32.totalorder %s16_s10, %s16_s10 }
   0xa   :  { %p1089_p3 = scmp.ne.s32.totalorder %s16_s10, %s1088_s18  ;;  %p1094_p5 = scmp.lt.s32.totalorder %s1088_s18, %s1088_s18 }
   0xc   :  { %p1095_p6 = por %p1094_p5, %p1093_p4 }
   0xe   :  { %p1096_p7 = pnand %p1095_p6, %p1089_p3 }
  0x10   :  { %1099 = shalt.err (!%p1096_p7)
}
  0x11   :  { %s1151_s19 = smov 512   ;;  %s1152_s20 = smov 32  }
  0x12   :  { %21 = dma.hbm_to_vmem [thread:$0]  %s1546_s0, 1024, %s16_s10, [#allocation4], %s1151_s19, %s1151_s19, %s1152_s20  }
  0x13   :  { %s1153_s23 = smov [#allocation6]   ;;  %s1100_s27 = scalar_lea.hbm %s1547_s1, 1536 }
  0x14   :  { %s27_s24 = sshll.u32 %s1153_s23, 4  ;;  %p1101_p8 = scmp.ne.s32.totalorder %s1547_s1, %s1100_s27  ;;  %s28_s24 = int_to_ptr.vmem [resolvable:$true] %s27_s24 }
  0x15   :  { %p1104_p9 = scmp.lt.u32.totalorder %s1100_s27, %s1547_s1 }
  0x17   :  { %p1106_p10 = pnand %p1104_p9, %p1101_p8 }
  0x19   :  { %1109 = shalt.err (!%p1106_p10)
}
  0x1a   :  { %s1110_s4 = scalar_lea.vmem %s28_s24, 1536  ;;  %p1115_p12 = scmp.lt.s32.totalorder %s28_s24, %s28_s24 }
  0x1b   :  { %p1111_p11 = scmp.ne.s32.totalorder %s28_s24, %s1110_s4  ;;  %p1116_p13 = scmp.lt.s32.totalorder %s1110_s4, %s1110_s4 }
  0x1d   :  { %p1117_p0 = por %p1116_p13, %p1115_p12 }
  0x1f   :  { %p1118_p1 = pnand %p1117_p0, %p1111_p11 }
  0x21   :  { %1121 = shalt.err (!%p1118_p1)
}
  0x22   :  { %s1154_s0 = smov 768   ;;  %s1155_s5 = smov 48  }
  0x23   :  { %33 = dma.hbm_to_vmem [thread:$0]  %s1547_s1, 1536, %s28_s24, [#allocation7], %s1154_s0, %s1154_s0, %s1155_s5  }
  0x24   :  { %1144 = dma.done.wait [#allocation4], 1024  }
  0x25   :  { %1145 = vsyncadd [#allocation4], 4294966272 }
  0x26   :  { %1146 = dma.done.wait [#allocation7], 1536  }
  0x27   :  { %1147 = vsyncadd [#allocation7], 4294965760  ;;  %v1156_v0 = vmov 0.0   ;;  %v1157_v1 = vmov 0   ;;  %v1212_v2 = vld [vmem:[#allocation3 + $0x8] sm:$0xff]  ;;  %v1216_v4 = vld [vmem:[#allocation3 + $0x18] sm:$0xff]  ;;  %v211_v34 = vlaneseq }
  0x28   :  { %129 = vmatprep.mubr.f32.mxu0 %v1156_v0  ;;  %200 = vmatprep.mubr.f32.mxu1 %v1156_v0  ;;  %v1214_v3 = vld [vmem:[#allocation3 + $0x28] sm:$0xff]  ;;  %v1220_v6 = vld [vmem:[#allocation3 + $0x38] sm:$0xff]  ;;  %v1222_v7 = vld [vmem:[#allocation3] sm:$0xff]  ;;  %vm61_vm0 = vcmask 130048   ;;  %s1158_s1 = smov 17   ;;  %s1159_s8 = smov 16  }
  0x29   :  { %1006 = vset.pattern.permute.xlu0 %v1157_v1  ;;  %1077 = vset.pattern.permute.xlu1 %v1157_v1  ;;  %v932_v5 = vpack.c.bf16 %v1214_v3, %v1212_v2  ;;  %v1224_v8 = vld [vmem:[#allocation3 + $0x20] sm:$0xff]  ;;  %v936_v9 = vpack.c.bf16 %v1220_v6, %v1216_v4  ;;  %v1230_v11 = vld [vmem:[#allocation3 + $0x10] sm:$0xff]  ;;  %v44_v14 = vld [vmem:[#allocation6 + $0x18] sm:$0xff]  ;;  %s1160_s9 = smov 15   ;;  %s1161_s10 = smov 1   ;;  %v1254_v35 = vand.u32 127, %v211_v34 }
  0x2a   :  { %v934_v10 = vpack.c.bf16 %v1224_v8, %v1222_v7  ;;  %v1232_v12 = vld [vmem:[#allocation3 + $0x30] sm:$0xff]  ;;  %v40_v15 = vld [vmem:[#allocation6] sm:$0xff]  ;;  %58 = vperm.xlu0 %1006, %v44_v14   ;;  %s1162_s11 = smov 127   ;;  %s1163_s12 = smov 113   ;;  %v46_v31 = vld [vmem:[#allocation6 + $0x28] sm:$0xff]  ;;  %vm1549_vm8 = vmmov 1  }
  0x2b   :  { %933 = vmatprep.subr.bf16.mxu0 %v932_v5  ;;  %v938_v13 = vpack.c.bf16 %v1232_v12, %v1230_v11  ;;  %937 = vmatprep.subr.bf16.mxu1 %v936_v9  ;;  %s1164_s13 = smov 112   ;;  %s1165_s14 = smov 111   ;;  %v45_v32 = vld [vmem:[#allocation6 + $0x20] sm:$0xff]  ;;  %v47_v33 = vld [vmem:[#allocation6 + $0x58] sm:$0xff]  ;;  %v1257_v36 = vadd.s32 128, %v1254_v35  ;;  %v214_v37 = vadd.s32 256, %v1254_v35 }
  0x2c   :  { %935 = vmatpush1.bf16.msra.mxu0 %v934_v10  ;;  %v1261_v38 = vadd.s32 384, %v1254_v35  ;;  %v216_v41 = vand.u32 255, %v1254_v35  ;;  %vm248_vm1 = vcmp.lt.s32.totalorder %v1254_v35, 17  ;;  %vm281_vm7 = vcmp.lt.s32.totalorder %v1254_v35, 16  ;;  %s1167_s15 = smov [#allocation8]  }
  0x2d   :  { %939 = vmatpush1.bf16.msra.mxu1 %v938_v13  ;;  %v217_v39 = vand.u32 255, %v1257_v36  ;;  %v218_v40 = vand.u32 255, %v214_v37  ;;  %s883_s16 = sshll.u32 %s1167_s15, 4  ;;  %s884_s16 = int_to_ptr.vmem [resolvable:$true] %s883_s16 }
  0x2e   :  { %v219_v42 = vand.u32 255, %v1261_v38  ;;  %v1272_v45 = vand.u32 15, %v216_v41  ;;  %vm1285_vm5 = vcmp.ge.s32.totalorder %v216_v41, 16  ;;  %s1122_s17 = scalar_lea.vmem %s884_s16, 1024  ;;  %p1127_p3 = scmp.lt.s32.totalorder %s884_s16, %s884_s16 }
  0x2f   :  { %896 = vmatmul.mubr.msk.f32.vlgmr.msra.gmra.mrb[0].mxu0 %vm61_vm0, %v40_v15  ;;  %v1268_v43 = vand.u32 15, %v217_v39  ;;  %v1270_v44 = vand.u32 15, %v218_v40  ;;  %vm1280_vm3 = vcmp.ge.s32.totalorder %v218_v40, 16  ;;  %p1123_p2 = scmp.ne.s32.totalorder %s884_s16, %s1122_s17  ;;  %p1128_p4 = scmp.lt.s32.totalorder %s1122_s17, %s1122_s17 }
  0x30   :  { %897 = vmatmul.mubr.msk.f32.vlgmr.msra.gmra.mrb[0].mxu1 %vm61_vm0, %v40_v15  ;;  %601 = vmatprep.mubr.f32.mxu0 %v1156_v0  ;;  %v1276_v47 = vand.u32 15, %v219_v42  ;;  %vm232_vm6 = vcmp.ge.s32.totalorder %v1272_v45, 1 }
  0x31   :  { %672 = vmatprep.mubr.f32.mxu1 %v1156_v0  ;;  %vm233_vm2 = vcmp.ge.s32.totalorder %v1268_v43, 1  ;;  %vm234_vm4 = vcmp.ge.s32.totalorder %v1270_v44, 1  ;;  %vm1313_vm12 = vmand %vm1285_vm5, %vm232_vm6  ;;  %vm1551_vm0 = vcmp.lt.s32.totalorder %v1268_v43, 15  ;;  %p1129_p5 = por %p1128_p4, %p1127_p3 }
  0x32   :  { %vm1294_vm9 = vmpackc.low %vm1549_vm8, %vm233_vm2  ;;  %vm235_vm10 = vcmp.ge.s32.totalorder %v1276_v47, 1 }
  0x33   :  { %vm1303_vm11 = vmand %vm1280_vm3, %vm234_vm4  ;;  %p1130_p6 = pnand %p1129_p5, %p1123_p2 }
  0x34   :  { %vm965_vm13 = vmpackc.low %vm1549_vm8, %vm235_vm10  ;;  %vm239_vm8 = vcmp.lt.s32.totalorder %v1276_v47, 15 }
  0x35   :  { %vm968_vm14 = vmpackc.low %vm1280_vm3, %vm1303_vm11  ;;  %vm1552_vm11 = vcmp.lt.s32.totalorder %v1272_v45, 15 }
  0x36   :  { %vm944_vm15 = vmpackc.low %vm1285_vm5, %vm1313_vm12  ;;  %vm343_vm12 = vcmp.lt.s32.totalorder %v1254_v35, 1 }
  0xa9   :  { %v59_v16 = vpop.permute.xlu0 %58 }
 0x102   :  { %v131_v17 = vpop.f32.mrb[0].mxu0 }
 0x103   :  { %v132_v18 = vadd.f32 %v131_v17, %v59_v16  ;;  %v202_v19 = vpop.f32.mrb[0].mxu1  ;;  %v133_v20 = vpop.f32.mrb[1].mxu0 }
 0x104   :  { %v203_v21 = vadd.f32 %v202_v19, %v59_v16  ;;  %v134_v22 = vadd.f32 %v133_v20, %v59_v16  ;;  %v204_v23 = vpop.f32.mrb[1].mxu1 }
 0x105   :  { %v1238_v24 = vmax.f32 %v132_v18, 0.0  ;;  %v205_v25 = vadd.f32 %v204_v23, %v59_v16 }
 0x106   :  { %v1240_v26 = vmax.f32 %v203_v21, 0.0  ;;  %v1242_v27 = vmax.f32 %v134_v22, 0.0 }
 0x107   :  { %v1244_v28 = vmax.f32 %v205_v25, 0.0 }
 0x108   :  { %v1007_v29 = vpack.i.bf16 %v1242_v27, %v1238_v24 }
 0x109   :  { %v1012_v30 = vpack.i.bf16 %v1244_v28, %v1240_v26 }
 0x10a   :  { %1008 = vrot.lane.b32.xlu0 %v1007_v29, %s1158_s1 }
 0x10b   :  { %1013 = vrot.lane.b32.xlu1 %v1012_v30, %s1158_s1 }
 0x10e   :  { %1023 = vrot.lane.b32.xlu0 %v1012_v30, %s1159_s8 }
 0x10f   :  { %1018 = vrot.lane.b32.xlu1 %v1007_v29, %s1159_s8 }
 0x112   :  { %1033 = vrot.lane.b32.xlu0 %v1012_v30, %s1160_s9 }
 0x113   :  { %1028 = vrot.lane.b32.xlu1 %v1007_v29, %s1160_s9 }
 0x116   :  { %1043 = vrot.lane.b32.xlu0 %v1012_v30, %s1161_s10 }
 0x117   :  { %1038 = vrot.lane.b32.xlu1 %v1007_v29, %s1161_s10 }
 0x11a   :  { %1053 = vrot.lane.b32.xlu0 %v1012_v30, %s1162_s11 }
 0x11b   :  { %1048 = vrot.lane.b32.xlu1 %v1007_v29, %s1162_s11 }
 0x11e   :  { %1063 = vrot.lane.b32.xlu0 %v1012_v30, %s1163_s12 }
 0x11f   :  { %1058 = vrot.lane.b32.xlu1 %v1007_v29, %s1163_s12 }
 0x122   :  { %1073 = vrot.lane.b32.xlu0 %v1012_v30, %s1164_s13 }
 0x123   :  { %1068 = vrot.lane.b32.xlu1 %v1007_v29, %s1164_s13 }
 0x126   :  { %461 = vrot.lane.b32.xlu0 %v1242_v27, %s1165_s14 }
 0x127   :  { %459 = vrot.lane.b32.xlu1 %v1238_v24, %s1165_s14 }
 0x12a   :  { %465 = vrot.lane.b32.xlu0 %v1244_v28, %s1165_s14 }
 0x12b   :  { %463 = vrot.lane.b32.xlu1 %v1240_v26, %s1165_s14 }
 0x12e   :  { %685 = vperm.xlu0 %1006, %v46_v31  }
 0x12f   :  { %530 = vperm.xlu1 %1077, %v45_v32  }
 0x133   :  { %690 = vperm.xlu1 %1077, %v47_v33  }
 0x17c   :  { %v1009_v46 = vpop.permute.xlu0 %1008 }
 0x17d   :  { %v1014_v48 = vpop.permute.xlu1 %1013  ;;  %v1011_v49 = vunpack.i.h.bf16 %v1009_v46  ;;  %v1010_v50 = vunpack.i.l.bf16 %v1009_v46 }
 0x17e   :  { %v1016_v52 = vunpack.i.h.bf16 %v1014_v48  ;;  %v1015_v53 = vunpack.i.l.bf16 %v1014_v48 }
 0x17f   :  { %v251_v61 = vsel %vm248_vm1, %v1010_v50, %v1011_v49 }
 0x180   :  { %v1024_v55 = vpop.permute.xlu0 %1023  ;;  %v249_v5 = vsel %vm248_vm1, %v1015_v53, %v1016_v52  ;;  %v250_v9 = vsel %vm248_vm1, %v1011_v49, %v1015_v53  ;;  %v252_v10 = vsel %vm248_vm1, %v1016_v52, %v1010_v50  ;;  %vm1553_vm1 = vcmp.lt.s32.totalorder %v1270_v44, 15 }
 0x181   :  { %v1019_v57 = vpop.permute.xlu1 %1018  ;;  %v1026_v58 = vunpack.i.h.bf16 %v1024_v55  ;;  %v1025_v59 = vunpack.i.l.bf16 %v1024_v55 }
 0x182   :  { %v1021_v62 = vunpack.i.h.bf16 %v1019_v57  ;;  %v1020_v63 = vunpack.i.l.bf16 %v1019_v57 }
 0x183   :  { %v282_v13 = vsel %vm281_vm7, %v1025_v59, %v1026_v58 }
 0x184   :  { %v284_v14 = vsel %vm281_vm7, %v1020_v63, %v1021_v62  ;;  %v285_v15 = vsel %vm281_vm7, %v1026_v58, %v1020_v63  ;;  %v283_v16 = vsel %vm281_vm7, %v1021_v62, %v1025_v59  ;;  %v964_v17 = vpack.c.bf16 %v282_v13, %v249_v5  ;;  %v1034_v18 = vpop.permute.xlu0 %1033 }
 0x185   :  { %v940_v19 = vpack.c.bf16 %v284_v14, %v251_v61  ;;  %v943_v20 = vpack.c.bf16 %v285_v15, %v252_v10  ;;  %v967_v21 = vpack.c.bf16 %v283_v16, %v250_v9  ;;  %v1029_v22 = vpop.permute.xlu1 %1028  ;;  %vm310_vm7 = vcmp.lt.s32.totalorder %v1254_v35, 15 }
 0x186   :  { %v1031_v23 = vunpack.i.h.bf16 %v1029_v22  ;;  %v1030_v25 = vunpack.i.l.bf16 %v1029_v22  ;;  %966 = vmatprep.subr.msk.bf16.mxu1 %vm965_vm13, %v964_v17  ;;  %v1036_v29 = vunpack.i.h.bf16 %v1034_v18  ;;  %v1035_v30 = vunpack.i.l.bf16 %v1034_v18  ;;  %vm1353_vm13 = vmpackc.low %vm233_vm2, %vm1551_vm0 }
 0x187   :  { %942 = vmatprep.subr.msk.bf16.mxu0 %vm1294_vm9, %v940_v19  ;;  %969 = vmatpush1.bf16.msk.msra.mxu1 %vm968_vm14, %v967_v21  ;;  %vm1362_vm9 = vmand %vm1280_vm3, %vm1553_vm1  ;;  %vm376_vm14 = vcmp.lt.s32.totalorder %v1254_v35, 127 }
 0x188   :  { %945 = vmatpush1.bf16.msk.msra.mxu0 %vm944_vm15, %v943_v20  ;;  %v1044_v31 = vpop.permute.xlu0 %1043  ;;  %v313_v41 = vsel %vm310_vm7, %v1030_v25, %v1031_v23  ;;  %vm1373_vm15 = vmand %vm1285_vm5, %vm1552_vm11  ;;  %v314_v50 = vsel %vm310_vm7, %v1036_v29, %v1030_v25  ;;  %v311_v51 = vsel %vm310_vm7, %v1035_v30, %v1036_v29  ;;  %v312_v52 = vsel %vm310_vm7, %v1031_v23, %v1035_v30 }
 0x189   :  { %v1039_v33 = vpop.permute.xlu1 %1038  ;;  %v1046_v34 = vunpack.i.h.bf16 %v1044_v31  ;;  %v1045_v37 = vunpack.i.l.bf16 %v1044_v31  ;;  %vm1389_vm3 = vmpackc.low %vm235_vm10, %vm239_vm8 }
 0x18a   :  { %v1041_v46 = vunpack.i.h.bf16 %v1039_v33  ;;  %v1040_v48 = vunpack.i.l.bf16 %v1039_v33  ;;  %vm974_vm5 = vmpackc.low %vm234_vm4, %vm1362_vm9 }
 0x18b   :  { %v344_v53 = vsel %vm343_vm12, %v1045_v37, %v1046_v34  ;;  %vm950_vm7 = vmpackc.low %vm232_vm6, %vm1373_vm15  ;;  %vm1420_vm15 = vcmp.lt.s32.totalorder %v217_v39, 240 }
 0x18c   :  { %v346_v55 = vsel %vm343_vm12, %v1040_v48, %v1041_v46  ;;  %v347_v56 = vsel %vm343_vm12, %v1046_v34, %v1040_v48  ;;  %v345_v57 = vsel %vm343_vm12, %v1041_v46, %v1045_v37  ;;  %v970_v58 = vpack.c.bf16 %v344_v53, %v311_v51  ;;  %v1054_v59 = vpop.permute.xlu0 %1053 }
 0x18d   :  { %v946_v60 = vpack.c.bf16 %v346_v55, %v313_v41  ;;  %v949_v61 = vpack.c.bf16 %v347_v56, %v314_v50  ;;  %v973_v62 = vpack.c.bf16 %v345_v57, %v312_v52  ;;  %v1049_v63 = vpop.permute.xlu1 %1048  ;;  %v1056_v1 = vunpack.i.h.bf16 %v1054_v59 }
 0x18e   :  { %v1051_v5 = vunpack.i.h.bf16 %v1049_v63  ;;  %v1050_v9 = vunpack.i.l.bf16 %v1049_v63  ;;  %v1055_v10 = vunpack.i.l.bf16 %v1054_v59  ;;  %972 = vmatprep.subr.msk.bf16.mxu1 %vm1389_vm3, %v970_v58  ;;  %vm1572_vm12 = vmmov 1  }
 0x18f   :  { %948 = vmatprep.subr.msk.bf16.mxu0 %vm1353_vm13, %v946_v60  ;;  %975 = vmatpush1.bf16.msk.msra.mxu1 %vm974_vm5, %v973_v62  ;;  %vm1414_vm9 = vmpackc.low %vm1551_vm0, %vm1572_vm12  ;;  %vm1426_vm3 = vcmp.lt.s32.totalorder %v219_v42, 240  ;;  %v41_v62 = vld [vmem:[#allocation6 + $0x8] sm:$0xff] }
 0x190   :  { %v379_v16 = vsel %vm376_vm14, %v1050_v9, %v1051_v5  ;;  %v380_v17 = vsel %vm376_vm14, %v1056_v1, %v1050_v9  ;;  %v377_v18 = vsel %vm376_vm14, %v1055_v10, %v1056_v1  ;;  %v378_v36 = vsel %vm376_vm14, %v1051_v5, %v1055_v10  ;;  %951 = vmatpush1.bf16.msk.msra.mxu0 %vm950_vm7, %v949_v61  ;;  %v1064_v39 = vpop.permute.xlu0 %1063  ;;  %vm977_vm13 = vmpackc.low %vm239_vm8, %vm1572_vm12 }
 0x191   :  { %v955_v38 = vpack.c.bf16 %v379_v16, %v1238_v24  ;;  %v976_v42 = vpack.c.bf16 %v380_v17, %v1244_v28  ;;  %v952_v19 = vpack.c.bf16 %v378_v36, %v1242_v27  ;;  %v979_v20 = vpack.c.bf16 %v377_v18, %v1240_v26  ;;  %v1059_v21 = vpop.permute.xlu1 %1058  ;;  %vm956_vm5 = vmpackc.low %vm1552_vm11, %vm1572_vm12  ;;  %v42_v17 = vld [vmem:[#allocation6 + $0x10] sm:$0xff]  ;;  %v43_v18 = vld [vmem:[#allocation6 + $0x40] sm:$0xff] }
 0x192   :  { %v1061_v22 = vunpack.i.h.bf16 %v1059_v21  ;;  %v1060_v23 = vunpack.i.l.bf16 %v1059_v21  ;;  %vm980_vm14 = vmpackc.low %vm1553_vm1, %vm1572_vm12  ;;  %vm405_vm7 = vcmp.lt.s32.totalorder %v1254_v35, 113  ;;  %v1066_v24 = vunpack.i.h.bf16 %v1064_v39 }
 0x193   :  { %v1065_v25 = vunpack.i.l.bf16 %v1064_v39  ;;  %954 = vmatprep.subr.msk.bf16.mxu0 %vm1414_vm9, %v952_v19  ;;  %978 = vmatprep.subr.msk.bf16.mxu1 %vm977_vm13, %v976_v42  ;;  %vm1458_vm0 = vmand %vm1420_vm15, %vm233_vm2  ;;  %vm438_vm11 = vcmp.lt.s32.totalorder %v1254_v35, 112  ;;  %vm1583_vm13 = vcmp.lt.s32.totalorder %v1268_v43, 15 }
 0x194   :  { %957 = vmatpush1.bf16.msk.msra.mxu0 %vm956_vm5, %v955_v38  ;;  %v1074_v27 = vpop.permute.xlu0 %1073  ;;  %vm1467_vm1 = vmand %vm1426_vm3, %vm235_vm10  ;;  %981 = vmatpush1.bf16.msk.msra.mxu1 %vm980_vm14, %v979_v20  ;;  %v408_v32 = vsel %vm405_vm7, %v1060_v23, %v1061_v22  ;;  %v409_v37 = vsel %vm405_vm7, %v1066_v24, %v1060_v23 }
 0x195   :  { %v1069_v29 = vpop.permute.xlu1 %1068  ;;  %v1076_v30 = vunpack.i.h.bf16 %v1074_v27  ;;  %v1075_v31 = vunpack.i.l.bf16 %v1074_v27  ;;  %vm959_vm2 = vmpackc.low %vm1420_vm15, %vm1458_vm0  ;;  %v406_v40 = vsel %vm405_vm7, %v1065_v25, %v1066_v24  ;;  %v407_v41 = vsel %vm405_vm7, %v1061_v22, %v1065_v25 }
 0x196   :  { %v1071_v33 = vunpack.i.h.bf16 %v1069_v29  ;;  %v1070_v34 = vunpack.i.l.bf16 %v1069_v29  ;;  %vm983_vm10 = vmpackc.low %vm1426_vm3, %vm1467_vm1  ;;  %vm533_vm0 = vcmask 588800  }
 0x197   :  { %v439_v46 = vsel %vm438_vm11, %v1075_v31, %v1076_v30  ;;  %vm962_vm9 = vmpackc.low %vm1572_vm12, %vm232_vm6 }
 0x198   :  { %v441_v48 = vsel %vm438_vm11, %v1070_v34, %v1071_v33  ;;  %v442_v49 = vsel %vm438_vm11, %v1076_v30, %v1070_v34  ;;  %v440_v50 = vsel %vm438_vm11, %v1071_v33, %v1075_v31  ;;  %v985_v51 = vpack.c.bf16 %v439_v46, %v406_v40  ;;  %v462_v52 = vpop.permute.xlu0 %461  ;;  %vm986_vm1 = vmpackc.low %vm1572_vm12, %vm234_vm4 }
 0x199   :  { %v961_v53 = vpack.c.bf16 %v441_v48, %v408_v32  ;;  %v958_v54 = vpack.c.bf16 %v440_v50, %v407_v41  ;;  %v982_v55 = vpack.c.bf16 %v442_v49, %v409_v37  ;;  %v460_v56 = vpop.permute.xlu1 %459  ;;  %vm475_vm6 = vmand %vm1426_vm3, %vm239_vm8  ;;  %vm467_vm11 = vcmp.lt.s32.totalorder %v1254_v35, 111 }
 0x19a   :  { %vm473_vm4 = vmand %vm1420_vm15, %vm1583_vm13  ;;  %v470_v47 = vsel %vm467_vm11, %v460_v56, %v462_v52  ;;  %vm1584_vm8 = vcmp.lt.s32.totalorder %v1272_v45, 15  ;;  %vm1585_vm12 = vcmp.lt.s32.totalorder %v1270_v44, 15  ;;  %vm693_vm15 = vcmask 64512  }
 0x19b   :  { %960 = vmatprep.subr.msk.bf16.mxu0 %vm959_vm2, %v958_v54  ;;  %984 = vmatprep.subr.msk.bf16.mxu1 %vm983_vm10, %v982_v55 }
 0x19c   :  { %963 = vmatpush1.bf16.msk.msra.mxu0 %vm962_vm9, %v961_v53  ;;  %987 = vmatpush1.bf16.msk.msra.mxu1 %vm986_vm1, %v985_v51  ;;  %v466_v57 = vpop.permute.xlu0 %465 }
 0x19d   :  { %v464_v58 = vpop.permute.xlu1 %463  ;;  %v471_v59 = vsel %vm467_vm11, %v466_v57, %v460_v56 }
 0x19e   :  { %v469_v60 = vsel %vm467_vm11, %v462_v52, %v464_v58  ;;  %v468_v61 = vsel %vm467_vm11, %v464_v58, %v466_v57  ;;  %930 = vmatprep.subr.msk.mxu1 %vm475_vm6, %v471_v59 }
 0x19f   :  { %916 = vmatprep.subr.msk.mxu0 %vm473_vm4, %v469_v60 }
 0x1a0   :  { %917 = vmatpush1.msk.msra.mxu0 %vm1584_vm8, %v470_v47  ;;  %931 = vmatpush1.msk.msra.mxu1 %vm1585_vm12, %v468_v61 }
 0x1a1   :  { %898 = vmatmul.mubr.msk.f32.vlgmr.msra.gmra.mrb[2].mxu0 %vm533_vm0, %v41_v62  ;;  %899 = vmatmul.mubr.msk.f32.vlgmr.msra.gmra.mrb[2].mxu1 %vm533_vm0, %v41_v62 }
 0x1a2   :  { %764 = vmatprep.mubr.f32.mxu0 %v1156_v0  ;;  %841 = vmatprep.mubr.f32.mxu1 %v1156_v0 }
 0x1ad   :  { %v686_v36 = vpop.permute.xlu0 %685 }
 0x1ae   :  { %v531_v35 = vpop.permute.xlu1 %530 }
 0x1b2   :  { %v691_v24 = vpop.permute.xlu1 %690 }
 0x274   :  { %v603_v43 = vpop.f32.mrb[2].mxu0  ;;  %v674_v63 = vpop.f32.mrb[2].mxu1 }
 0x275   :  { %v604_v1 = vadd.f32 %v603_v43, %v531_v35  ;;  %v675_v5 = vadd.f32 %v674_v63, %v531_v35  ;;  %v605_v9 = vpop.f32.mrb[3].mxu0  ;;  %v676_v10 = vpop.f32.mrb[3].mxu1 }
 0x276   :  { %v606_v13 = vadd.f32 %v605_v9, %v531_v35  ;;  %v677_v14 = vadd.f32 %v676_v10, %v531_v35 }
 0x277   :  { %v679_v16 = vmax.f32 %v604_v1, 0.0  ;;  %v681_v44 = vmax.f32 %v675_v5, 0.0 }
 0x278   :  { %v680_v45 = vmax.f32 %v606_v13, 0.0  ;;  %v682_v15 = vmax.f32 %v677_v14, 0.0 }
 0x27a   :  { %700 = vmatprep.subr.mxu0 %v680_v45  ;;  %777 = vmatprep.subr.mxu1 %v682_v15 }
 0x27b   :  { %701 = vmatpush1.msra.mxu0 %v679_v16  ;;  %778 = vmatpush1.msra.mxu1 %v681_v44 }
 0x27c   :  { %900 = vmatmul.mubr.msk.f32.vlgmr.msra.gmra.mrb[4].mxu0 %vm693_vm15, %v42_v17  ;;  %902 = vmatmul.mubr.msk.f32.vlgmr.msra.gmra.mrb[4].mxu1 %vm693_vm15, %v42_v17 }
 0x27d   :  { %770 = vmatprep.mubr.f32.mxu0 %v1156_v0  ;;  %847 = vmatprep.mubr.f32.mxu1 %v1156_v0 }
 0x280   :  { %901 = vmatmul.mubr.msk.f32.gmra.mrb[6].mxu0 %vm693_vm15, %v43_v18  ;;  %903 = vmatmul.mubr.msk.f32.gmra.mrb[6].mxu1 %vm693_vm15, %v43_v18 }
 0x34f   :  { %v766_v39 = vpop.f32.mrb[4].mxu0  ;;  %v843_v38 = vpop.f32.mrb[4].mxu1 }
 0x350   :  { %v767_v42 = vadd.f32 %v766_v39, %v686_v36  ;;  %v844_v19 = vadd.f32 %v843_v38, %v686_v36  ;;  %v768_v20 = vpop.f32.mrb[5].mxu0  ;;  %v845_v21 = vpop.f32.mrb[5].mxu1 }
 0x351   :  { %v769_v22 = vadd.f32 %v768_v20, %v686_v36  ;;  %v846_v23 = vadd.f32 %v845_v21, %v686_v36 }
 0x352   :  { %v854_v25 = vadd.f32 %v767_v42, %v1222_v7  ;;  %v856_v26 = vadd.f32 %v844_v19, %v1230_v11 }
 0x353   :  { %v855_v27 = vadd.f32 %v769_v22, %v1212_v2  ;;  %v857_v0 = vadd.f32 %v846_v23, %v1216_v4  ;;  %v772_v28 = vpop.f32.mrb[6].mxu0  ;;  %v849_v29 = vpop.f32.mrb[6].mxu1 }
 0x354   :  { %v862_v30 = vmax.f32 %v854_v25, 0.0  ;;  %v864_v31 = vmax.f32 %v856_v26, 0.0  ;;  %v773_v32 = vadd.f32 %v772_v28, %v691_v24  ;;  %v850_v33 = vadd.f32 %v849_v29, %v691_v24  ;;  %v774_v34 = vpop.f32.mrb[7].mxu0  ;;  %v851_v37 = vpop.f32.mrb[7].mxu1 }
 0x355   :  { %v863_v40 = vmax.f32 %v855_v27, 0.0  ;;  %v865_v41 = vmax.f32 %v857_v0, 0.0  ;;  %v775_v46 = vadd.f32 %v774_v34, %v691_v24  ;;  %v852_v48 = vadd.f32 %v851_v37, %v691_v24 }
 0x356   :  { %870 = vst [vmem:[#allocation8] sm:$0xff] %v862_v30  ;;  %872 = vst [vmem:[#allocation8 + $0x10] sm:$0xff] %v864_v31  ;;  %v858_v7 = vadd.f32 %v773_v32, %v1224_v8  ;;  %v860_v2 = vadd.f32 %v850_v33, %v1232_v12 }
 0x357   :  { %871 = vst [vmem:[#allocation8 + $0x8] sm:$0xff] %v863_v40  ;;  %873 = vst [vmem:[#allocation8 + $0x18] sm:$0xff] %v865_v41  ;;  %v859_v4 = vadd.f32 %v775_v46, %v1214_v3  ;;  %v861_v11 = vadd.f32 %v852_v48, %v1220_v6 }
 0x358   :  { %v866_v49 = vmax.f32 %v858_v7, 0.0  ;;  %v868_v50 = vmax.f32 %v860_v2, 0.0 }
 0x359   :  { %v867_v51 = vmax.f32 %v859_v4, 0.0  ;;  %v869_v52 = vmax.f32 %v861_v11, 0.0 }
 0x35a   :  { %874 = vst [vmem:[#allocation8 + $0x20] sm:$0xff] %v866_v49  ;;  %876 = vst [vmem:[#allocation8 + $0x30] sm:$0xff] %v868_v50 }
 0x35b   :  { %875 = vst [vmem:[#allocation8 + $0x28] sm:$0xff] %v867_v51  ;;  %877 = vst [vmem:[#allocation8 + $0x38] sm:$0xff] %v869_v52 }
 0x35c   :  { %1133 = shalt.err (!%p1130_p6)
}
 0x35d   :  { %s1134_s22 = scalar_lea.hbm %s1548_s2, 1024 }
 0x35e   :  { %p1135_p7 = scmp.ne.s32.totalorder %s1548_s2, %s1134_s22  ;;  %p1138_p8 = scmp.lt.u32.totalorder %s1134_s22, %s1548_s2 }
 0x360   :  { %p1140_p9 = pnand %p1138_p8, %p1135_p7 }
 0x362   :  { %1143 = shalt.err (!%p1140_p9)
}
 0x363   :  { %889 = dma.vmem_to_hbm [thread:$0]  %s884_s16, 1024, %s1548_s2, [#allocation5], %s1151_s19, %s1151_s19, %s1152_s20  }
 0x364   :  { %1148 = dma.done.wait [#allocation5], 1024  }
 0x365   :  { %1149 = vsyncadd [#allocation5], 4294966272 }
 0x366   :  { %893 = vsyncpa [#allocation4], 1 }
 0x367   :  { %894 = vsyncpa [#allocation7], 1 }
 0x368   :  { %895 = vsyncpa [#allocation5], 1 }

</bundles_post_ra>
